<compile_context>
chip_gen: v7x
topology: tpu7x:2x2x1
jax: 0.10.0
libtpu: 0.0.40
codegen_flags: <defaults>
</compile_context>

<pallas_src>
import functools

import jax
import jax.numpy as jnp
from jax.experimental import pallas as pl
from jax.experimental.pallas import tpu as pltpu


def _round_up(n, m):
    return ((n + m - 1) // m) * m


def _span_gather_kernel(idx_ref, x_ref, out_ref, *, dx):
    """One grid step = one (batch, feature-chunk, span-tile).

    idx_ref: VMEM (1, span_tile, 2) int32 -- begin/end token indices for this span tile.
    x_ref:   VMEM (1, seq_len, dx)        -- feature chunk of the whole sequence for batch b,
                                             resident across the span-tile grid axis.
    out_ref: VMEM (1, span_tile, 2*dx)    -- [begin_chunk | end_chunk] columns for this tile.
    """
    idx = idx_ref[0]                       # (span_tile, 2) int32
    x = x_ref[0]                           # (seq_len, dx)
    span_tile = idx.shape[0]
    seq_len = x.shape[0]

    # One-hot gather on the MXU: onehot[j, s] = (s == index[j]); onehot @ x == x[index].
    # Exact (exactly one nonzero per row), dense (span_tile, dx) results -> dense stores.
    pos = jax.lax.broadcasted_iota(jnp.int32, (span_tile, seq_len), 1)
    onehot_b = (pos == idx[:, 0:1]).astype(x.dtype)
    onehot_e = (pos == idx[:, 1:2]).astype(x.dtype)
    begin = jnp.dot(onehot_b, x, preferred_element_type=jnp.float32)
    end = jnp.dot(onehot_e, x, preferred_element_type=jnp.float32)

    out_ref[0, :, 0:dx] = begin.astype(out_ref.dtype)
    out_ref[0, :, dx:2 * dx] = end.astype(out_ref.dtype)


def span_representation(x, span_indices, *, span_tile=None, feat_chunk=None,
                        x_vmem_budget_bytes=16 << 20):
    """x: (bs, seq_len, x_dim) float; span_indices: (bs, num_spans, 2) int.

    Returns (bs, num_spans, 2*x_dim): concat of gathered begin/end token states.
    """
    bs, seq_len, x_dim = x.shape
    num_spans = span_indices.shape[1]
    itemsize = jnp.dtype(x.dtype).itemsize

    # dtype-aware span-tile granularity (sublane packing: f32->8, bf16->16, int8->32 rows).
    sub = {4: 8, 2: 16, 1: 32}.get(itemsize, 8)
    if span_tile is None:
        span_tile = min(128, _round_up(num_spans, sub))
    assert span_tile > 0 and span_tile % sub == 0, \
        f"span_tile must be a positive multiple of {sub} for dtype {x.dtype}"
    padded = _round_up(num_spans, span_tile)
    n_tiles = padded // span_tile

    # Feature chunking: keep the double-buffered x slab under budget (v7x 64 MiB physical,
    # v5e 16 MiB default scoped VMEM). Chunks stay 128-lane multiples -> lane-dense stores.
    if feat_chunk is None:
        dx = x_dim
        if x_dim % 128 == 0:
            while 2 * seq_len * dx * itemsize > x_vmem_budget_bytes and dx % 256 == 0:
                dx //= 2
        feat_chunk = dx
    dx = feat_chunk
    assert x_dim % dx == 0 and (dx == x_dim or dx % 128 == 0), \
        "feat_chunk must divide x_dim and be a multiple of 128 (or equal x_dim)"
    n_feat = x_dim // dx

    # Indices: clamp (no in-kernel bounds checks), int32, pad span axis with a valid index.
    idx = jnp.clip(span_indices.astype(jnp.int32), 0, seq_len - 1)
    if padded != num_spans:
        idx = jnp.pad(idx, ((0, 0), (0, padded - num_spans), (0, 0)))

    # Explicit scoped-VMEM limit from actual buffer sizes (double-buffered) + headroom.
    x_buf = seq_len * dx * itemsize
    out_buf = span_tile * 2 * dx * itemsize
    idx_buf = span_tile * 128 * 4                       # (span_tile, 2) int32, lane-padded
    scratch = 2 * span_tile * seq_len * itemsize + 2 * span_tile * dx * 4
    vmem_bytes = 2 * (x_buf + out_buf + idx_buf) + scratch + (2 << 20)
    vmem_bytes = int(min(max(vmem_bytes, 4 << 20), 128 << 20))

    kernel = functools.partial(_span_gather_kernel, dx=dx)

    out = pl.pallas_call(
        kernel,
        out_shape=jax.ShapeDtypeStruct((bs, padded, 2 * x_dim), x.dtype),
        grid=(bs, n_feat, n_tiles),
        in_specs=[
            # Span-index tile for this (batch, span-tile); tiny, re-fetched per step.
            pl.BlockSpec((1, span_tile, 2), lambda b, f, t: (b, t, 0)),
            # Feature chunk of the whole sequence for batch b; block index is constant
            # across the span-tile axis -> VMEM-resident, x read from HBM once per batch.
            pl.BlockSpec((1, seq_len, dx), lambda b, f, t: (b, 0, f)),
        ],
        out_specs=pl.BlockSpec((1, span_tile, 2 * dx), lambda b, f, t: (b, t, f)),
        compiler_params=pltpu.CompilerParams(
            dimension_semantics=("parallel", "parallel", "parallel"),
            vmem_limit_bytes=vmem_bytes),
    )(idx, x)

    if n_feat > 1:
        # Kernel wrote per-chunk interleaved columns [b_0|e_0|b_1|e_1|...]; regroup to [b|e].
        out = (out.reshape(bs, padded, n_feat, 2, dx)
                  .transpose(0, 1, 3, 2, 4)
                  .reshape(bs, padded, 2 * x_dim))
    if padded != num_spans:
        out = out[:, :num_spans, :]
    return out


def _reference(x, span_indices):
    def one(xb, sb):
        return jnp.concatenate([xb[sb[:, 0]], xb[sb[:, 1]]], axis=-1)
    return jax.vmap(one)(x, span_indices)


def _make_inputs(key, bs, seq_len, x_dim, num_spans, dtype=jnp.float32):
    kx, kb, kw = jax.random.split(key, 3)
    x = jax.random.normal(kx, (bs, seq_len, x_dim), dtype=dtype)
    begin = jax.random.randint(kb, (bs, num_spans), 0, seq_len)
    width = jax.random.randint(kw, (bs, num_spans), 0, 5)
    end = jnp.minimum(begin + width, seq_len - 1)
    span_indices = jnp.stack([begin, end], axis=-1).astype(jnp.int32)
    return x, span_indices


if __name__ == "__main__":
    key = jax.random.PRNGKey(0)
    k1, k2 = jax.random.split(key)

    # Small default-path check (single span tile, no feature chunking).
    x, si = _make_inputs(k1, bs=2, seq_len=16, x_dim=32, num_spans=12)
    out = span_representation(x, si)
    jax.block_until_ready(out)
    ref = _reference(x, si)
    assert out.shape == (2, 12, 64)
    assert jnp.allclose(out, ref), "mismatch vs reference (default path)"

    # Exercise multiple span tiles (with padding) and the feature-chunked path.
    x2, si2 = _make_inputs(k2, bs=2, seq_len=64, x_dim=256, num_spans=40)
    out2 = span_representation(x2, si2, span_tile=16, feat_chunk=128)
    jax.block_until_ready(out2)
    ref2 = _reference(x2, si2)
    assert out2.shape == (2, 40, 512)
    assert jnp.allclose(out2, ref2), "mismatch vs reference (chunked path)"

    print("KERNEL_OK")
</pallas_src>

<mosaic_0001>
module attributes {stable_mosaic.version = 11 : i64} {
  func.func @_span_gather_kernel(%arg0: i32, %arg1: i32, %arg2: i32, %arg3: memref<1x16x2xi32, #tpu.memory_space<vmem>>, %arg4: memref<1x16x32xf32, #tpu.memory_space<vmem>>, %arg5: memref<1x16x64xf32, #tpu.memory_space<vmem>>) attributes {dimension_semantics = [#tpu.dimension_semantics<parallel>, #tpu.dimension_semantics<parallel>, #tpu.dimension_semantics<parallel>], iteration_bounds = array<i64: 2, 1, 1>, scalar_prefetch = 0 : i64, scratch_operands = 0 : i64, tpu.core_type = #tpu.core_type<tc>, window_params = [{transform_indices = @transform_0, window_bounds = array<i64: 1, 16, 2>}, {transform_indices = @transform_1, window_bounds = array<i64: 1, 16, 32>}, {transform_indices = @transform_2, window_bounds = array<i64: 1, 16, 64>}]} {
    %c0 = arith.constant 0 : index
    %c0_0 = arith.constant 0 : index
    %c0_1 = arith.constant 0 : index
    %0 = vector.load %arg3[%c0, %c0_0, %c0_1] : memref<1x16x2xi32, #tpu.memory_space<vmem>>, vector<1x16x2xi32>
    %1 = vector.shape_cast %0 : vector<1x16x2xi32> to vector<16x2xi32>
    %c0_2 = arith.constant 0 : index
    %c0_3 = arith.constant 0 : index
    %c0_4 = arith.constant 0 : index
    %2 = vector.load %arg4[%c0_2, %c0_3, %c0_4] : memref<1x16x32xf32, #tpu.memory_space<vmem>>, vector<1x16x32xf32>
    %3 = vector.shape_cast %2 : vector<1x16x32xf32> to vector<16x32xf32>
    %4 = tpu.iota {dimensions = array<i32: 1>} : vector<16x16xi32>
    %5 = vector.extract_strided_slice %1 {offsets = [0, 0], sizes = [16, 1], strides = [1, 1]} : vector<16x2xi32> to vector<16x1xi32>
    %6 = vector.broadcast %5 : vector<16x1xi32> to vector<16x16xi32>
    %7 = arith.cmpi eq, %4, %6 : vector<16x16xi32>
    %8 = arith.extui %7 : vector<16x16xi1> to vector<16x16xi32>
    %9 = arith.sitofp %8 : vector<16x16xi32> to vector<16x16xf32>
    %10 = vector.extract_strided_slice %1 {offsets = [0, 1], sizes = [16, 1], strides = [1, 1]} : vector<16x2xi32> to vector<16x1xi32>
    %11 = vector.broadcast %10 : vector<16x1xi32> to vector<16x16xi32>
    %12 = arith.cmpi eq, %4, %11 : vector<16x16xi32>
    %13 = arith.extui %12 : vector<16x16xi1> to vector<16x16xi32>
    %14 = arith.sitofp %13 : vector<16x16xi32> to vector<16x16xf32>
    %cst = arith.constant dense<0.000000e+00> : vector<16x32xf32>
    %15 = tpu.matmul %9, %3, %cst {dimension_numbers = #tpu.dot_dimension_numbers<[1], [0], [0], [1], [0, 0, 1, 1], [], []>} : vector<16x16xf32>, vector<16x32xf32>, vector<16x32xf32> -> vector<16x32xf32>
    %cst_5 = arith.constant dense<0.000000e+00> : vector<16x32xf32>
    %16 = tpu.matmul %14, %3, %cst_5 {dimension_numbers = #tpu.dot_dimension_numbers<[1], [0], [0], [1], [0, 0, 1, 1], [], []>} : vector<16x16xf32>, vector<16x32xf32>, vector<16x32xf32> -> vector<16x32xf32>
    %c0_6 = arith.constant 0 : index
    %c0_7 = arith.constant 0 : index
    %c0_8 = arith.constant 0 : index
    %17 = vector.load %arg5[%c0_6, %c0_7, %c0_8] : memref<1x16x64xf32, #tpu.memory_space<vmem>>, vector<1x16x32xf32>
    %18 = vector.shape_cast %17 : vector<1x16x32xf32> to vector<16x32xf32>
    %19 = vector.shape_cast %15 : vector<16x32xf32> to vector<1x16x32xf32>
    tpu.vector_store %arg5[%c0_6, %c0_7, %c0_8], %19 {strides = array<i32>} : memref<1x16x64xf32, #tpu.memory_space<vmem>>, vector<1x16x32xf32>,
    %c0_9 = arith.constant 0 : index
    %c0_10 = arith.constant 0 : index
    %c32 = arith.constant 32 : index
    %20 = vector.load %arg5[%c0_9, %c0_10, %c32] : memref<1x16x64xf32, #tpu.memory_space<vmem>>, vector<1x16x32xf32>
    %21 = vector.shape_cast %20 : vector<1x16x32xf32> to vector<16x32xf32>
    %22 = vector.shape_cast %16 : vector<16x32xf32> to vector<1x16x32xf32>
    tpu.vector_store %arg5[%c0_9, %c0_10, %c32], %22 {strides = array<i32>} : memref<1x16x64xf32, #tpu.memory_space<vmem>>, vector<1x16x32xf32>,
    return
  }
  func.func @transform_0(%arg0: i32, %arg1: i32, %arg2: i32) -> (i32, i32, i32) {
    %c0_i32 = arith.constant 0 : i32
    %c0_i32_0 = arith.constant 0 : i32
    return %arg0, %arg2, %c0_i32 : i32, i32, i32
  }
  func.func @transform_1(%arg0: i32, %arg1: i32, %arg2: i32) -> (i32, i32, i32) {
    %c0_i32 = arith.constant 0 : i32
    %c0_i32_0 = arith.constant 0 : i32
    return %arg0, %c0_i32, %arg1 : i32, i32, i32
  }
  func.func @transform_2(%arg0: i32, %arg1: i32, %arg2: i32) -> (i32, i32, i32) {
    %c0_i32 = arith.constant 0 : i32
    return %arg0, %arg2, %arg1 : i32, i32, i32
  }
}

</mosaic_0001>

<bundles_post_ra>
// kernel: tpu_custom_call.1
= control target key start
LH: loop header
LB: loop body
LE: loop exit
PB: predicated region body
PF: predicated region fallthrough
CT: control target
= control target key end

     0   :  { %7 = vsyncpa [#allocation3], 0  ;;  %s881_s0 = inlined_call_operand.vmem [shape: s32[2,16,2], index: 0, kind: input, shape index: {}]   ;;  %s882_s1 = inlined_call_operand.vmem [shape: f32[2,16,32], index: 1, kind: input, shape index: {}]   ;;  %s883_s2 = inlined_call_operand.hbm [shape: f32[2,16,64], index: 2, kind: output, shape index: {}]  }
   0x1   :  { %9 = vsyncpa [#allocation3 + $0x1], 0  ;;  %s759_s9 = smov 0   ;;  %s761_s10 = smov 0  }
   0x2   :  { %s763_s11 = smov 0   ;;  %s765_s12 = smov 0  }
   0x3   :  { %s767_s13 = smov 0   ;;  %s769_s14 = smov 0  }
   0x4 LB: > { %s538_s15 = sadd.s32 4294967295, %s735_s14   ;;  %s539_s16 = sadd.s32 4294967294, %s735_s14   ;;  %s735_s14 = sphi %s769_s14, %s15_s14   ;;  %s731_s13 = sphi %s767_s13, %s890_s13   ;;  %s727_s12 = sphi %s765_s12, %s889_s12   ;;  %s723_s11 = sphi %s763_s11, %s888_s11   ;;  %s719_s10 = sphi %s761_s10, %s887_s10   ;;  %s715_s9 = sphi %s759_s9, %s886_s9  }
   0x5   : > { %s34_s17 = sadd.s32 1, %s731_s13  ;;  %s101_s18 = sadd.s32 1, %s723_s11 }
   0x6   : > { %p36_p0 = scmp.ge.s32.totalorder %s34_s17, 2  ;;  %p111_p1 = scmp.ne.s32.totalorder %s723_s11, %s719_s10 }
   0x7   : > { %p112_p2 = scmp.eq.s32.totalorder %s538_s15, 1  ;;  %p117_p3 = scmp.ne.s32.totalorder %s719_s10, %s715_s9 }
   0x8   : > { %s892_s17 = smov (%p36_p0, %s34_s17), 0  ;;  %p118_p5 = scmp.eq.s32.totalorder %s539_s16, 1 }
   0x9   : > { %p799_p4 = por %p112_p2, %p111_p1  ;;  %s94_s20 = ssub.s32 %s731_s13, %s892_s17 }
   0xa   : > { %p542_p6 = scmp.ge.s32.totalorder %s735_s14, 1  ;;  %p99_p7 = scmp.eq.s32.totalorder %s94_s20, 0 }
   0xb   : > { %p806_p8 = por %p118_p5, %p117_p3  ;;  %p160_p9 = scmp.lt.s32.totalorder %s735_s14, 3 }
   0xc   : > { %s812_s22 = scalar_select %p99_p7, %s723_s11, %s101_s18  }
   0xd   : > { %p161_p10 = pnand %p542_p6, %p160_p9 }
   0xe   : > { %p195_p11 = scmp.lt.s32.totalorder (!%p161_p10), %s727_s12, 1  ;;  %v737_v0 = vmov (!%p161_p10), 1   ;;  %v738_v1 = vmov (!%p161_p10), 0   ;;  %v217_v7 = vlaneseq (!%p161_p10)  ;;  %vm243_vm0 = vcmask (!%p161_p10), 130048   ;;  %s191_s3 = sand.u32 (!%p161_p10), 1, %s719_s10  }
   0xf   : > { %164 = sbr.rel (%p161_p10) target bundleno = 505 (0x1f9), region = 28  ;;  %655 = vset.pattern.permute.xlu0 (!%p161_p10), %v737_v0  ;;  %656 = vset.pattern.permute.xlu1 (!%p161_p10), %v738_v1  ;;  %v739_v11 = vmov (!%p161_p10), 0.0   ;;  %s543_s4 = sshll.u32 (!%p161_p10), %s191_s3, 4  ;;  %vm406_vm5 = vcmask (!%p161_p10), 261120   ;;  %vm417_vm6 = vcmask (!%p161_p10), 523520  }
  0x10   : > { %v218_v8 = vand.u32 (!%p161_p10), 127, %v217_v7  ;;  %s740_s5 = smov (!%p161_p10), 32   ;;  %s193_s6 = scalar_lea.vmem (!%p161_p10), [#allocation2], %s543_s4 }
  0x11   : > { %s563_s7 = sshll.u32 (!%p161_p10), %s727_s12, 8  ;;  %s437_s8 = sshll.u32 (!%p161_p10), %s193_s6, 4  ;;  %s833_s8 = int_to_ptr.vmem [resolvable:$true] %s437_s8 }
  0x12   : > { %s831_s18 = scalar_lea.hbm (!%p161_p10), %s883_s2, %s563_s7  ;;  %s835_s20 = scalar_lea.sflag (!%p161_p10), [#allocation3], %s191_s3 }
  0x16   : > { %s196_s23 = scalar_select %p195_p11, %s727_s12, 1 }
  0x17   : > { %s741_s12 = smov [#allocation2]  }
  0x18   : > { %s561_s24 = sshll.u32 %s196_s23, 4  ;;  %s657_s23 = scalar_lea.vmem %s833_s8, 256 }
  0x19   : > { %s202_s27 = scalar_lea.vmem %s881_s0, %s561_s24  ;;  %s211_s30 = scalar_lea.vmem %s882_s1, %s561_s24 }
  0x1a   : > { %v213_v2 = vld [vmem:[%s202_s27] sm:$0xff]  ;;  %v216_v4 = vld [vmem:[%s211_s30 + $0x8] sm:$0xff]  ;;  %p658_p12 = scmp.ne.s32.totalorder %s833_s8, %s657_s23  ;;  %s661_s24 = sshll.u32 %s741_s12, 4  ;;  %s662_s24 = int_to_ptr.vmem [resolvable:$false] %s661_s24 }
  0x1b   : > { %v215_v3 = vld [vmem:[%s211_s30] sm:$0xff]  ;;  %232 = vperm.xlu0 %655, %v213_v2   ;;  %220 = vperm.xlu1 %656, %v213_v2   ;;  %v214_v6 = vld [vmem:[%s202_s27 + $0x8] sm:$0xff]  ;;  %s663_s25 = scalar_lea.vmem %s662_s24, 512  ;;  %p664_p1 = scmp.lt.s32.totalorder %s833_s8, %s662_s24 }
  0x1c   : > { %v586_v5 = vpack.c.bf16 %v216_v4, %v215_v3  ;;  %p659_p13 = pnand %p658_p12, %p799_p4  ;;  %p665_p2 = scmp.lt.s32.totalorder %s663_s25, %s657_s23 }
  0x1e   : > { %591 = vmatprep.subr.bf16.mxu1 %v586_v5  ;;  %587 = vmatprep.subr.bf16.mxu0 %v586_v5  ;;  %p660_p0 = pneg %p659_p13  ;;  %p666_p3 = por %p665_p2, %p664_p1 }
  0x1f   : > { %593 = vmatpush3.bf16.msra.mxu1 %v586_v5  ;;  %589 = vmatpush3.bf16.msra.mxu0 %v586_v5 }
  0x20   : > { %235 = vperm.xlu0 %655, %v214_v6   ;;  %223 = vperm.xlu1 %656, %v214_v6   ;;  %p667_p5 = pnand %p666_p3, %p660_p0 }
  0x9a   : > { %v233_v9 = vpop.permute.xlu0 %232  ;;  %v221_v10 = vpop.permute.xlu1 %220 }
  0x9b   : > { %vm237_vm1 = vcmp.eq.s32.totalorder %v218_v8, %v233_v9  ;;  %vm225_vm2 = vcmp.eq.s32.totalorder %v218_v8, %v221_v10 }
  0x9c   : > { %v550_v12 = vsel %vm237_vm1, 1.0, %v739_v11  ;;  %v548_v13 = vsel %vm225_vm2, 1.0, %v739_v11 }
  0x9d   : > { %583 = vmatprep.mubr.msk.f32.mxu1 %vm243_vm0, %v550_v12  ;;  %576 = vmatprep.mubr.msk.f32.mxu0 %vm243_vm0, %v548_v13 }
  0x9f   : > { %v236_v14 = vpop.permute.xlu0 %235  ;;  %v224_v15 = vpop.permute.xlu1 %223 }
  0xa0   : > { %vm238_vm3 = vcmp.eq.s32.totalorder %v218_v8, %v236_v14  ;;  %vm226_vm4 = vcmp.eq.s32.totalorder %v218_v8, %v224_v15 }
  0xa1   : > { %v551_v16 = vsel %vm238_vm3, 1.0, %v739_v11  ;;  %v549_v17 = vsel %vm226_vm4, 1.0, %v739_v11 }
  0xa2   : > { %584 = vmatmul.mubr.msk.f32.vlgmr.msra.gmra.mrb[0].mxu1 %vm243_vm0, %v551_v16  ;;  %577 = vmatmul.mubr.msk.f32.vlgmr.msra.gmra.mrb[0].mxu0 %vm243_vm0, %v549_v17 }
 0x175   : > { %v585_v18 = vpop.f32.mrb[0].mxu1  ;;  %v578_v19 = vpop.f32.mrb[0].mxu0 }
 0x176   : > { %413 = vrot.lane.b32.xlu1 %v585_v18, %s740_s5  ;;  %v397_v20 = vpop.f32.mrb[1].mxu1  ;;  %408 = vst.msk [vmem:[%s193_s6 + $0x8] sm:$0xff] %vm406_vm5, %v578_v19  ;;  %v316_v21 = vpop.f32.mrb[1].mxu0 }
 0x177   : > { %411 = vrot.lane.b32.xlu0 %v397_v20, %s740_s5  ;;  %407 = vst.msk [vmem:[%s193_s6] sm:$0xff] %vm406_vm5, %v316_v21 }
 0x1e8   : > { %v414_v22 = vpop.permute.xlu1 %413 }
 0x1e9   : > { %419 = vst.msk [vmem:[%s193_s6 + $0x8] sm:$0xff] %vm417_vm6, %v414_v22  ;;  %v412_v23 = vpop.permute.xlu0 %411 }
 0x1ea   : > { %418 = vst.msk [vmem:[%s193_s6] sm:$0xff] %vm417_vm6, %v412_v23 }
 0x1eb   : > { %670 = shalt.err (!%p667_p5)
}
 0x1ec   : > { %s671_s26 = scalar_lea.hbm %s831_s18, 256  ;;  %s675_s29 = scalar_lea.hbm %s883_s2, 512 }
 0x1ed   : > { %p672_p6 = scmp.ne.s32.totalorder %s831_s18, %s671_s26  ;;  %p676_p10 = scmp.lt.u32.totalorder %s831_s18, %s883_s2 }
 0x1ee   : > { %p677_p11 = scmp.lt.u32.totalorder %s675_s29, %s671_s26  ;;  %p679_p13 = scmp.lt.u32.totalorder %s671_s26, %s831_s18 }
 0x1ef   : > { %p673_p7 = pnand %p672_p6, %p799_p4 }
 0x1f0   : > { %p678_p12 = por %p677_p11, %p676_p10 }
 0x1f1   : > { %p674_p9 = pneg %p673_p7 }
 0x1f2   : > { %p680_p0 = por %p679_p13, %p678_p12 }
 0x1f4   : > { %p681_p1 = pnand %p680_p0, %p674_p9 }
 0x1f6   : > { %684 = shalt.err (!%p681_p1)
}
 0x1f7   : > { %s742_s4 = smov 128   ;;  %s743_s5 = smov 8  }
 0x1f8   : > { %594 = dma.vmem_to_hbm [thread:$0]  (%p799_p4), %s833_s8, 256, %s831_s18, %s835_s20, %s742_s4, %s742_s4, %s743_s5  }
 0x1f9 PF: > { %p600_p2 = scmp.ge.s32.totalorder %s735_s14, 2  ;;  %s452_s6 = sand.u32 1, %s715_s9  }
 0x1fa   : > { %s453_s7 = scalar_lea.sflag [#allocation3], %s452_s6 }
 0x1fb   : > { %p597_p3 = pnand %p600_p2, %p806_p8 }
 0x1fd   : > { %710 = dma.done.wait (!%p597_p3), %s453_s7, 256  }
 0x1fe   : > { %712 = vsyncadd (!%p597_p3), %s453_s7, 4294967040  ;;  %s15_s14 = sadd.s32 1, %s735_s14   ;;  %s886_s9 = smov %s719_s10 }
 0x1ff   : > { %p12_p5 = scmp.ge.s32.totalorder %s15_s14, 4   ;;  %s887_s10 = smov %s723_s11 }
 0x200   : > { %s888_s11 = smov %s812_s22  ;;  %s889_s12 = smov %s731_s13 }
 0x201   : > { %s890_s13 = smov %s892_s17  ;;  %14 = sbr.rel (!%p12_p5) target bundleno = 4 (0x4), region = 66 }
 0x208   :  { %458 = vsyncpa [#allocation3], 1 }
 0x209   :  { %460 = vsyncpa [#allocation3 + $0x1], 1 }

</bundles_post_ra>
